<compile_context>
chip_gen: v6e
topology: v6e:2x2x1
jax: 0.10.0
libtpu: 0.0.40
codegen_flags: <defaults>
</compile_context>

<pallas_src>
import functools

import jax
import jax.numpy as jnp
from jax import lax
from jax.experimental import pallas as pl
from jax.experimental.pallas import tpu as pltpu


def _contrastive_partials_kernel(pred_ref, target_ref, perm_ref,
                                 pp_ref, tt_ref, pt_ref, pn_ref,
                                 *, d_total, tk, slab, use_neg, small_batch):
    """Streams D in chunks; accumulates lane-slab partial sums into outputs."""
    c = pl.program_id(0)   # parallel D-split (v7x megacore)
    k = pl.program_id(1)   # chunks within this split
    nc = pl.num_programs(0)
    nk = pl.num_programs(1)

    @pl.when(k == 0)
    def _init():
        pp_ref[...] = jnp.zeros_like(pp_ref)
        tt_ref[...] = jnp.zeros_like(tt_ref)
        pt_ref[...] = jnp.zeros_like(pt_ref)
        pn_ref[...] = jnp.zeros_like(pn_ref)

    def accumulate(mask_tail):
        p = pred_ref[...].astype(jnp.float32)    # [B, TK]
        t = target_ref[...].astype(jnp.float32)  # [B, TK]
        if mask_tail:
            # Only the final chunk pays for the iota/compare/select masking.
            lane = lax.broadcasted_iota(jnp.int32, p.shape, 1)
            k_global = c * nk + k
            valid = (k_global * tk + lane) < d_total
            p = jnp.where(valid, p, 0.0)
            t = jnp.where(valid, t, 0.0)

        n = None
        if use_neg:
            if small_batch:
                # Tiny B: exact f32 one-hot selection on the MXU. The one-hot
                # is built in-kernel from the [B,1] perm column (nothing B x B
                # lives in HBM or is double-buffered in VMEM).
                b = p.shape[0]
                onehot = (lax.broadcasted_iota(jnp.int32, (b, b), 1)
                          == perm_ref[...]).astype(jnp.float32)
                n = jnp.dot(onehot, t, preferred_element_type=jnp.float32)
            else:
                # Large B: O(B*TK) sublane gather of the resident chunk.
                # TODO(synk): this gather path (B > 64) is not exercised by the
                # small smoke tests below.
                idx = jnp.broadcast_to(perm_ref[...], t.shape)
                n = jnp.take_along_axis(t, idx, axis=0)

        # Lane-slab accumulation: pure VPU adds, no per-chunk XLU reduction,
        # full-width unmasked stores back to the resident output blocks.
        pp = pp_ref[...]
        tt = tt_ref[...]
        pt = pt_ref[...]
        pn = pn_ref[...] if use_neg else None
        for g in range(tk // slab):
            s = slice(g * slab, (g + 1) * slab)
            ps = p[:, s]
            ts = t[:, s]
            pp = pp + ps * ps
            tt = tt + ts * ts
            pt = pt + ps * ts
            if use_neg:
                pn = pn + ps * n[:, s]
        pp_ref[...] = pp
        tt_ref[...] = tt
        pt_ref[...] = pt
        if use_neg:
            pn_ref[...] = pn

    if d_total % tk == 0:
        accumulate(False)
    else:
        is_tail = jnp.logical_and(c == nc - 1, k == nk - 1)

        @pl.when(jnp.logical_not(is_tail))
        def _full():
            accumulate(False)

        @pl.when(is_tail)
        def _tail():
            accumulate(True)


def contrastive_loss(pred, target, *, key, loss_weight=1.0, temperature=0.07,
                     margin=1.0, feature_dim=128, block_lanes=2048):
    """Pallas implementation of ContrastiveLoss.forward.

    pred, target: [B, C, H, W] (same shape; bf16 accepted, accumulated in f32).
    Returns a scalar of pred's dtype.
    """
    del temperature, feature_dim  # unused in the reference forward pass
    b = pred.shape[0]
    d = 1
    for s in pred.shape[1:]:
        d *= s
    pred_flat = pred.reshape(b, d)
    target_flat = target.reshape(b, d)
    itemsize = jnp.dtype(pred_flat.dtype).itemsize

    use_neg = b > 1
    if use_neg:
        perm = jax.random.permutation(key, b).astype(jnp.int32)
    else:
        perm = jnp.zeros((1,), dtype=jnp.int32)  # unused (neg path disabled)
    perm_col = perm.reshape(b, 1)

    # ---- generation-aware VMEM budget -------------------------------------
    try:
        phys_vmem = int(getattr(pltpu.get_tpu_info(), "vmem_capacity_bytes",
                                64 * 1024 * 1024))
    except Exception:
        phys_vmem = 64 * 1024 * 1024  # conservative (v7x per-TC size)
    vmem_limit = min(3 * phys_vmem // 4, 64 * 1024 * 1024)   # 48MiB v7x, 64MiB v5e/v6e
    data_budget = min(phys_vmem // 4, 32 * 1024 * 1024)       # 16MiB v7x, 32MiB v5e/v6e

    slab = 128 if d >= 128 else d
    small_batch = b <= 64

    # Reserve the four resident [B, slab] f32 partial-sum blocks (x2 buffers)
    # before sizing the streamed feature chunks.
    acc_bytes = 4 * b * slab * 4 * 2
    lane_budget = max(data_budget - acc_bytes, 2 * 1024 * 1024)

    if d >= 128:
        d_aligned = (d // 128) * 128
        # Per feature column: 2 inputs x 2 pipeline buffers (input dtype) plus
        # f32 temporaries (casts/products; + gather index/rows for big B).
        col_bytes = b * (2 * 2 * itemsize +
                         (28 if (use_neg and not small_batch) else 16))
        tk = min(block_lanes, d_aligned, max(128, lane_budget // col_bytes))
        tk = max(128, (tk // 128) * 128)
    else:
        tk = d  # tiny feature dim: single full-width block
    grid_k_total = pl.cdiv(d, tk)

    # v7x megacore: split the D-chunk loop across a leading "parallel" axis
    # with per-split partial sums (no shared scratch -> no cross-core race).
    # Harmless (serial) on 1-TC chips.  Only split when it divides evenly so
    # no fully out-of-bounds chunk is ever fetched.
    nsplit = 2 if (grid_k_total >= 2 and grid_k_total % 2 == 0) else 1
    kp = grid_k_total // nsplit

    # v5e: deeper input buffering when the kernel degenerates to many small
    # chunks (per-step DMA latency is long relative to compute there).
    buffered = (tk <= 256 and grid_k_total >= 8)

    def stream_spec(index_map):
        if buffered:
            try:
                return pl.BlockSpec((b, tk), index_map,
                                    pipeline_mode=pl.Buffered(3))
            except (TypeError, AttributeError):
                pass
        return pl.BlockSpec((b, tk), index_map)

    feat_map = lambda c, k: (0, c * kp + k)

    kernel = functools.partial(
        _contrastive_partials_kernel,
        d_total=d, tk=tk, slab=slab, use_neg=use_neg, small_batch=small_batch)

    acc_shape = jax.ShapeDtypeStruct((nsplit, b, slab), jnp.float32)
    acc_spec = pl.BlockSpec((None, b, slab), lambda c, k: (c, 0, 0))

    cost = pl.CostEstimate(
        flops=(6 + (4 if use_neg else 0)) * b * d,
        transcendentals=0,
        bytes_accessed=2 * b * d * itemsize + 4 * nsplit * b * slab * 4 + b * 4,
    )

    pp, tt, pt, pn = pl.pallas_call(
        kernel,
        out_shape=(acc_shape, acc_shape, acc_shape, acc_shape),
        grid=(nsplit, kp),
        in_specs=[
            stream_spec(feat_map),                        # pred chunks
            stream_spec(feat_map),                        # target chunks
            pl.BlockSpec((b, 1), lambda c, k: (0, 0)),    # perm column (tiny, resident)
        ],
        out_specs=(acc_spec, acc_spec, acc_spec, acc_spec),
        compiler_params=pltpu.CompilerParams(
            dimension_semantics=("parallel", "arbitrary"),
            vmem_limit_bytes=vmem_limit,
        ),
        cost_estimate=cost,
    )(pred_flat, target_flat, perm_col)

    # ---- O(B) epilogue: combine split/lane partials, finalize the loss ----
    pp = pp.sum(axis=(0, 2))   # [B]  ||pred||^2
    tt = tt.sum(axis=(0, 2))   # [B]  ||target||^2
    pt = pt.sum(axis=(0, 2))   # [B]  <pred, target>
    pn = pn.sum(axis=(0, 2))   # [B]  <pred, target[perm]>

    norm_eps = jnp.float32(1e-12)   # F.normalize eps
    cos_eps = jnp.float32(1e-8)     # F.cosine_similarity eps
    p_norm = jnp.sqrt(pp)
    t_norm = jnp.sqrt(tt)
    p_den = jnp.maximum(p_norm, norm_eps)
    t_den = jnp.maximum(t_norm, norm_eps)
    p_hat = p_norm / p_den          # norms of the normalized vectors
    t_hat = t_norm / t_den

    pos_sim = (pt / (p_den * t_den)) / jnp.maximum(p_hat * t_hat, cos_eps)
    if use_neg:
        # ||neg|| is just a row permutation of ||target|| -- derived, not
        # accumulated.
        n_den = t_den[perm]
        n_hat = t_hat[perm]
        neg_sim = (pn / (p_den * n_den)) / jnp.maximum(p_hat * n_hat, cos_eps)
    else:
        neg_sim = jnp.zeros_like(pos_sim)

    loss = -jnp.mean(pos_sim) + jnp.mean(
        jnp.maximum(neg_sim + jnp.float32(margin), 0.0))
    loss = jnp.where(jnp.isnan(loss) | jnp.isinf(loss), jnp.float32(0.0), loss)
    return (loss * jnp.float32(loss_weight)).astype(pred.dtype)


def _reference_loss(pred, target, key, margin=1.0, loss_weight=1.0):
    """Pure-JAX reference matching the PyTorch forward."""
    b = pred.shape[0]
    pf = pred.reshape(b, -1).astype(jnp.float32)
    tf = target.reshape(b, -1).astype(jnp.float32)
    pn = pf / jnp.maximum(jnp.linalg.norm(pf, axis=1, keepdims=True), 1e-12)
    tn = tf / jnp.maximum(jnp.linalg.norm(tf, axis=1, keepdims=True), 1e-12)

    def cos(a, c):
        return jnp.sum(a * c, axis=1) / jnp.maximum(
            jnp.linalg.norm(a, axis=1) * jnp.linalg.norm(c, axis=1), 1e-8)

    pos = cos(pn, tn)
    if b > 1:
        perm = jax.random.permutation(key, b)
        neg = cos(pn, tn[perm])
    else:
        neg = jnp.zeros_like(pos)
    loss = -jnp.mean(pos) + jnp.mean(jnp.maximum(neg + margin, 0.0))
    return loss * loss_weight


if __name__ == "__main__":
    key = jax.random.PRNGKey(0)
    k1, k2, k3, k4, k5, k6, k7, k8 = jax.random.split(key, 8)

    # Case 1: lane-aligned D, several feature chunks (exercises the D-chunk
    # pipeline and the 2-way parallel D split: grid (2, 2)).
    B, C, H, W = 2, 4, 16, 16  # D = 1024
    pred = jax.random.normal(k1, (B, C, H, W), dtype=jnp.float32)
    target = jax.random.normal(k2, (B, C, H, W), dtype=jnp.float32)
    loss = contrastive_loss(pred, target, key=k3, loss_weight=1.0,
                            temperature=0.07, margin=1.0, block_lanes=256)
    jax.block_until_ready(loss)
    ref = _reference_loss(pred, target, k3, margin=1.0, loss_weight=1.0)
    assert jnp.allclose(loss, ref, atol=1e-5, rtol=1e-5), (loss, ref)

    # Case 2: D not a multiple of 128 (masked tail chunk), odd B, 2-way split
    # with one chunk per split.
    B2, C2, H2, W2 = 3, 3, 5, 9  # D = 135
    pred2 = jax.random.normal(k4, (B2, C2, H2, W2), dtype=jnp.float32)
    target2 = jax.random.normal(k5, (B2, C2, H2, W2), dtype=jnp.float32)
    loss2 = contrastive_loss(pred2, target2, key=k6, loss_weight=0.5, margin=1.0)
    jax.block_until_ready(loss2)
    ref2 = _reference_loss(pred2, target2, k6, margin=1.0, loss_weight=0.5)
    assert jnp.allclose(loss2, ref2, atol=1e-5, rtol=1e-5), (loss2, ref2)

    # Case 3: batch_size == 1 (negative path disabled, neg_sim == 0).
    B3, C3, H3, W3 = 1, 4, 8, 8  # D = 256
    pred3 = jax.random.normal(k7, (B3, C3, H3, W3), dtype=jnp.float32)
    target3 = jax.random.normal(k8, (B3, C3, H3, W3), dtype=jnp.float32)
    loss3 = contrastive_loss(pred3, target3, key=k8, loss_weight=1.0, margin=1.0)
    jax.block_until_ready(loss3)
    ref3 = _reference_loss(pred3, target3, k8, margin=1.0, loss_weight=1.0)
    assert jnp.allclose(loss3, ref3, atol=1e-5, rtol=1e-5), (loss3, ref3)

    print("KERNEL_OK")
</pallas_src>

<mosaic_0001>
module attributes {stable_mosaic.version = 11 : i64} {
  func.func @_contrastive_partials_kernel(%arg0: i32, %arg1: i32, %arg2: memref<2x256xf32, #tpu.memory_space<vmem>>, %arg3: memref<2x256xf32, #tpu.memory_space<vmem>>, %arg4: memref<2x1xi32, #tpu.memory_space<vmem>>, %arg5: memref<1x2x128xf32, #tpu.memory_space<vmem>>, %arg6: memref<1x2x128xf32, #tpu.memory_space<vmem>>, %arg7: memref<1x2x128xf32, #tpu.memory_space<vmem>>, %arg8: memref<1x2x128xf32, #tpu.memory_space<vmem>>) attributes {dimension_semantics = [#tpu.dimension_semantics<parallel>, #tpu.dimension_semantics<arbitrary>], iteration_bounds = array<i64: 2, 2>, scalar_prefetch = 0 : i64, scratch_operands = 0 : i64, tpu.core_type = #tpu.core_type<tc>, window_params = [{transform_indices = @transform_0, window_bounds = array<i64: 2, 256>}, {transform_indices = @transform_1, window_bounds = array<i64: 2, 256>}, {pipeline_mode = #tpu.pipeline_mode<synchronous>, transform_indices = @transform_2, window_bounds = array<i64: 2, 1>}, {transform_indices = @transform_3, window_bounds = array<i64: 1, 2, 128>}, {transform_indices = @transform_4, window_bounds = array<i64: 1, 2, 128>}, {transform_indices = @transform_5, window_bounds = array<i64: 1, 2, 128>}, {transform_indices = @transform_6, window_bounds = array<i64: 1, 2, 128>}]} {
    %c0_i32 = arith.constant 0 : i32
    %0 = arith.cmpi eq, %arg1, %c0_i32 : i32
    %1 = arith.extui %0 : i1 to i32
    %c0_i32_0 = arith.constant 0 : i32
    %2 = arith.cmpi ne, %1, %c0_i32_0 : i32
    scf.if %2 {
      %cst_30 = arith.constant 0.000000e+00 : f32
      %54 = vector.broadcast %cst_30 : f32 to vector<2x128xf32>
      %c0_31 = arith.constant 0 : index
      %c0_32 = arith.constant 0 : index
      %c0_33 = arith.constant 0 : index
      %55 = vector.load %arg5[%c0_31, %c0_32, %c0_33] : memref<1x2x128xf32, #tpu.memory_space<vmem>>, vector<1x2x128xf32>
      %56 = vector.shape_cast %55 : vector<1x2x128xf32> to vector<2x128xf32>
      %57 = vector.shape_cast %54 : vector<2x128xf32> to vector<1x2x128xf32>
      tpu.vector_store %arg5[%c0_31, %c0_32, %c0_33], %57 {strides = array<i32>} : memref<1x2x128xf32, #tpu.memory_space<vmem>>, vector<1x2x128xf32>,
      %cst_34 = arith.constant 0.000000e+00 : f32
      %58 = vector.broadcast %cst_34 : f32 to vector<2x128xf32>
      %c0_35 = arith.constant 0 : index
      %c0_36 = arith.constant 0 : index
      %c0_37 = arith.constant 0 : index
      %59 = vector.load %arg6[%c0_35, %c0_36, %c0_37] : memref<1x2x128xf32, #tpu.memory_space<vmem>>, vector<1x2x128xf32>
      %60 = vector.shape_cast %59 : vector<1x2x128xf32> to vector<2x128xf32>
      %61 = vector.shape_cast %58 : vector<2x128xf32> to vector<1x2x128xf32>
      tpu.vector_store %arg6[%c0_35, %c0_36, %c0_37], %61 {strides = array<i32>} : memref<1x2x128xf32, #tpu.memory_space<vmem>>, vector<1x2x128xf32>,
      %cst_38 = arith.constant 0.000000e+00 : f32
      %62 = vector.broadcast %cst_38 : f32 to vector<2x128xf32>
      %c0_39 = arith.constant 0 : index
      %c0_40 = arith.constant 0 : index
      %c0_41 = arith.constant 0 : index
      %63 = vector.load %arg7[%c0_39, %c0_40, %c0_41] : memref<1x2x128xf32, #tpu.memory_space<vmem>>, vector<1x2x128xf32>
      %64 = vector.shape_cast %63 : vector<1x2x128xf32> to vector<2x128xf32>
      %65 = vector.shape_cast %62 : vector<2x128xf32> to vector<1x2x128xf32>
      tpu.vector_store %arg7[%c0_39, %c0_40, %c0_41], %65 {strides = array<i32>} : memref<1x2x128xf32, #tpu.memory_space<vmem>>, vector<1x2x128xf32>,
      %cst_42 = arith.constant 0.000000e+00 : f32
      %66 = vector.broadcast %cst_42 : f32 to vector<2x128xf32>
      %c0_43 = arith.constant 0 : index
      %c0_44 = arith.constant 0 : index
      %c0_45 = arith.constant 0 : index
      %67 = vector.load %arg8[%c0_43, %c0_44, %c0_45] : memref<1x2x128xf32, #tpu.memory_space<vmem>>, vector<1x2x128xf32>
      %68 = vector.shape_cast %67 : vector<1x2x128xf32> to vector<2x128xf32>
      %69 = vector.shape_cast %66 : vector<2x128xf32> to vector<1x2x128xf32>
      tpu.vector_store %arg8[%c0_43, %c0_44, %c0_45], %69 {strides = array<i32>} : memref<1x2x128xf32, #tpu.memory_space<vmem>>, vector<1x2x128xf32>,
    } else {
    }
    %c0 = arith.constant 0 : index
    %c0_1 = arith.constant 0 : index
    %3 = vector.load %arg2[%c0, %c0_1] : memref<2x256xf32, #tpu.memory_space<vmem>>, vector<2x256xf32>
    %c0_2 = arith.constant 0 : index
    %c0_3 = arith.constant 0 : index
    %4 = vector.load %arg3[%c0_2, %c0_3] : memref<2x256xf32, #tpu.memory_space<vmem>>, vector<2x256xf32>
    %5 = tpu.iota {dimensions = array<i32: 1>} : vector<2x2xi32>
    %c0_4 = arith.constant 0 : index
    %c0_5 = arith.constant 0 : index
    %6 = vector.load %arg4[%c0_4, %c0_5] : memref<2x1xi32, #tpu.memory_space<vmem>>, vector<2x1xi32>
    %7 = vector.broadcast %6 : vector<2x1xi32> to vector<2x2xi32>
    %8 = arith.cmpi eq, %5, %7 : vector<2x2xi32>
    %9 = arith.extui %8 : vector<2x2xi1> to vector<2x2xi32>
    %10 = arith.sitofp %9 : vector<2x2xi32> to vector<2x2xf32>
    %cst = arith.constant dense<0.000000e+00> : vector<2x256xf32>
    %11 = tpu.matmul %10, %4, %cst {dimension_numbers = #tpu.dot_dimension_numbers<[1], [0], [0], [1], [0, 0, 1, 1], [], []>} : vector<2x2xf32>, vector<2x256xf32>, vector<2x256xf32> -> vector<2x256xf32>
    %c0_6 = arith.constant 0 : index
    %c0_7 = arith.constant 0 : index
    %c0_8 = arith.constant 0 : index
    %12 = vector.load %arg5[%c0_6, %c0_7, %c0_8] : memref<1x2x128xf32, #tpu.memory_space<vmem>>, vector<1x2x128xf32>
    %13 = vector.shape_cast %12 : vector<1x2x128xf32> to vector<2x128xf32>
    %c0_9 = arith.constant 0 : index
    %c0_10 = arith.constant 0 : index
    %c0_11 = arith.constant 0 : index
    %14 = vector.load %arg6[%c0_9, %c0_10, %c0_11] : memref<1x2x128xf32, #tpu.memory_space<vmem>>, vector<1x2x128xf32>
    %15 = vector.shape_cast %14 : vector<1x2x128xf32> to vector<2x128xf32>
    %c0_12 = arith.constant 0 : index
    %c0_13 = arith.constant 0 : index
    %c0_14 = arith.constant 0 : index
    %16 = vector.load %arg7[%c0_12, %c0_13, %c0_14] : memref<1x2x128xf32, #tpu.memory_space<vmem>>, vector<1x2x128xf32>
    %17 = vector.shape_cast %16 : vector<1x2x128xf32> to vector<2x128xf32>
    %c0_15 = arith.constant 0 : index
    %c0_16 = arith.constant 0 : index
    %c0_17 = arith.constant 0 : index
    %18 = vector.load %arg8[%c0_15, %c0_16, %c0_17] : memref<1x2x128xf32, #tpu.memory_space<vmem>>, vector<1x2x128xf32>
    %19 = vector.shape_cast %18 : vector<1x2x128xf32> to vector<2x128xf32>
    %20 = vector.extract_strided_slice %3 {offsets = [0, 0], sizes = [2, 128], strides = [1, 1]} : vector<2x256xf32> to vector<2x128xf32>
    %21 = vector.extract_strided_slice %4 {offsets = [0, 0], sizes = [2, 128], strides = [1, 1]} : vector<2x256xf32> to vector<2x128xf32>
    %22 = arith.mulf %20, %20 : vector<2x128xf32>
    %23 = arith.addf %13, %22 : vector<2x128xf32>
    %24 = arith.mulf %21, %21 : vector<2x128xf32>
    %25 = arith.addf %15, %24 : vector<2x128xf32>
    %26 = arith.mulf %20, %21 : vector<2x128xf32>
    %27 = arith.addf %17, %26 : vector<2x128xf32>
    %28 = vector.extract_strided_slice %11 {offsets = [0, 0], sizes = [2, 128], strides = [1, 1]} : vector<2x256xf32> to vector<2x128xf32>
    %29 = arith.mulf %20, %28 : vector<2x128xf32>
    %30 = arith.addf %19, %29 : vector<2x128xf32>
    %31 = vector.extract_strided_slice %3 {offsets = [0, 128], sizes = [2, 128], strides = [1, 1]} : vector<2x256xf32> to vector<2x128xf32>
    %32 = vector.extract_strided_slice %4 {offsets = [0, 128], sizes = [2, 128], strides = [1, 1]} : vector<2x256xf32> to vector<2x128xf32>
    %33 = arith.mulf %31, %31 : vector<2x128xf32>
    %34 = arith.addf %23, %33 : vector<2x128xf32>
    %35 = arith.mulf %32, %32 : vector<2x128xf32>
    %36 = arith.addf %25, %35 : vector<2x128xf32>
    %37 = arith.mulf %31, %32 : vector<2x128xf32>
    %38 = arith.addf %27, %37 : vector<2x128xf32>
    %39 = vector.extract_strided_slice %11 {offsets = [0, 128], sizes = [2, 128], strides = [1, 1]} : vector<2x256xf32> to vector<2x128xf32>
    %40 = arith.mulf %31, %39 : vector<2x128xf32>
    %41 = arith.addf %30, %40 : vector<2x128xf32>
    %c0_18 = arith.constant 0 : index
    %c0_19 = arith.constant 0 : index
    %c0_20 = arith.constant 0 : index
    %42 = vector.load %arg5[%c0_18, %c0_19, %c0_20] : memref<1x2x128xf32, #tpu.memory_space<vmem>>, vector<1x2x128xf32>
    %43 = vector.shape_cast %42 : vector<1x2x128xf32> to vector<2x128xf32>
    %44 = vector.shape_cast %34 : vector<2x128xf32> to vector<1x2x128xf32>
    tpu.vector_store %arg5[%c0_18, %c0_19, %c0_20], %44 {strides = array<i32>} : memref<1x2x128xf32, #tpu.memory_space<vmem>>, vector<1x2x128xf32>,
    %c0_21 = arith.constant 0 : index
    %c0_22 = arith.constant 0 : index
    %c0_23 = arith.constant 0 : index
    %45 = vector.load %arg6[%c0_21, %c0_22, %c0_23] : memref<1x2x128xf32, #tpu.memory_space<vmem>>, vector<1x2x128xf32>
    %46 = vector.shape_cast %45 : vector<1x2x128xf32> to vector<2x128xf32>
    %47 = vector.shape_cast %36 : vector<2x128xf32> to vector<1x2x128xf32>
    tpu.vector_store %arg6[%c0_21, %c0_22, %c0_23], %47 {strides = array<i32>} : memref<1x2x128xf32, #tpu.memory_space<vmem>>, vector<1x2x128xf32>,
    %c0_24 = arith.constant 0 : index
    %c0_25 = arith.constant 0 : index
    %c0_26 = arith.constant 0 : index
    %48 = vector.load %arg7[%c0_24, %c0_25, %c0_26] : memref<1x2x128xf32, #tpu.memory_space<vmem>>, vector<1x2x128xf32>
    %49 = vector.shape_cast %48 : vector<1x2x128xf32> to vector<2x128xf32>
    %50 = vector.shape_cast %38 : vector<2x128xf32> to vector<1x2x128xf32>
    tpu.vector_store %arg7[%c0_24, %c0_25, %c0_26], %50 {strides = array<i32>} : memref<1x2x128xf32, #tpu.memory_space<vmem>>, vector<1x2x128xf32>,
    %c0_27 = arith.constant 0 : index
    %c0_28 = arith.constant 0 : index
    %c0_29 = arith.constant 0 : index
    %51 = vector.load %arg8[%c0_27, %c0_28, %c0_29] : memref<1x2x128xf32, #tpu.memory_space<vmem>>, vector<1x2x128xf32>
    %52 = vector.shape_cast %51 : vector<1x2x128xf32> to vector<2x128xf32>
    %53 = vector.shape_cast %41 : vector<2x128xf32> to vector<1x2x128xf32>
    tpu.vector_store %arg8[%c0_27, %c0_28, %c0_29], %53 {strides = array<i32>} : memref<1x2x128xf32, #tpu.memory_space<vmem>>, vector<1x2x128xf32>,
    return
  }
  func.func @transform_0(%arg0: i32, %arg1: i32) -> (i32, i32) {
    %c2_i32 = arith.constant 2 : i32
    %0 = arith.muli %arg0, %c2_i32 : i32
    %1 = arith.addi %0, %arg1 : i32
    %c0_i32 = arith.constant 0 : i32
    %c0_i32_0 = arith.constant 0 : i32
    return %c0_i32, %1 : i32, i32
  }
  func.func @transform_1(%arg0: i32, %arg1: i32) -> (i32, i32) {
    %c2_i32 = arith.constant 2 : i32
    %0 = arith.muli %arg0, %c2_i32 : i32
    %1 = arith.addi %0, %arg1 : i32
    %c0_i32 = arith.constant 0 : i32
    %c0_i32_0 = arith.constant 0 : i32
    return %c0_i32, %1 : i32, i32
  }
  func.func @transform_2(%arg0: i32, %arg1: i32) -> (i32, i32) {
    %c0_i32 = arith.constant 0 : i32
    %c0_i32_0 = arith.constant 0 : i32
    %c0_i32_1 = arith.constant 0 : i32
    return %c0_i32, %c0_i32_0 : i32, i32
  }
  func.func @transform_3(%arg0: i32, %arg1: i32) -> (i32, i32, i32) {
    %c0_i32 = arith.constant 0 : i32
    %c0_i32_0 = arith.constant 0 : i32
    %c0_i32_1 = arith.constant 0 : i32
    return %arg0, %c0_i32, %c0_i32_0 : i32, i32, i32
  }
  func.func @transform_4(%arg0: i32, %arg1: i32) -> (i32, i32, i32) {
    %c0_i32 = arith.constant 0 : i32
    %c0_i32_0 = arith.constant 0 : i32
    %c0_i32_1 = arith.constant 0 : i32
    return %arg0, %c0_i32, %c0_i32_0 : i32, i32, i32
  }
  func.func @transform_5(%arg0: i32, %arg1: i32) -> (i32, i32, i32) {
    %c0_i32 = arith.constant 0 : i32
    %c0_i32_0 = arith.constant 0 : i32
    %c0_i32_1 = arith.constant 0 : i32
    return %arg0, %c0_i32, %c0_i32_0 : i32, i32, i32
  }
  func.func @transform_6(%arg0: i32, %arg1: i32) -> (i32, i32, i32) {
    %c0_i32 = arith.constant 0 : i32
    %c0_i32_0 = arith.constant 0 : i32
    %c0_i32_1 = arith.constant 0 : i32
    return %arg0, %c0_i32, %c0_i32_0 : i32, i32, i32
  }
}

</mosaic_0001>

<bundles_post_ra>
// kernel: tpu_custom_call.1
= control target key start
LH: loop header
LB: loop body
LE: loop exit
PB: predicated region body
PF: predicated region fallthrough
CT: control target
= control target key end

     0   :  { %s1591_s0 = inlined_call_operand.hbm [shape: f32[2,1024], index: 0, kind: input, shape index: {}]   ;;  %s1592_s1 = inlined_call_operand.hbm [shape: f32[2,1024], index: 1, kind: input, shape index: {}]   ;;  %s1593_s2 = inlined_call_operand.vmem [shape: s32[2,1], index: 2, kind: input, shape index: {}]   ;;  %s1594_s3 = inlined_call_operand.hbm [shape: f32[2,2,128], index: 3, kind: output, shape index: {0}]   ;;  %s1595_s4 = inlined_call_operand.hbm [shape: f32[2,2,128], index: 4, kind: output, shape index: {1}]   ;;  %s1596_s5 = inlined_call_operand.hbm [shape: f32[2,2,128], index: 5, kind: output, shape index: {2}]   ;;  %s1597_s6 = inlined_call_operand.hbm [shape: f32[2,2,128], index: 6, kind: output, shape index: {3}]  }
   0x1   :  { %1604 = sst [smem:[#allocation26_spill]] %s1591_s0 }
   0x2   :  { %12 = vsyncpa [#allocation3], 0 }
   0x3   :  { %14 = vsyncpa [#allocation3 + $0x1], 0 }
   0x4   :  { %15 = vsyncpa [#allocation6], 0 }
   0x5   :  { %17 = vsyncpa [#allocation6 + $0x1], 0 }
   0x6   :  { %18 = vsyncpa [#allocation4], 0 }
   0x7   :  { %20 = vsyncpa [#allocation4 + $0x1], 0 }
   0x8   :  { %21 = vsyncpa [#allocation9], 0 }
   0x9   :  { %23 = vsyncpa [#allocation9 + $0x1], 0 }
   0xa   :  { %24 = vsyncpa [#allocation12], 0 }
   0xb   :  { %26 = vsyncpa [#allocation12 + $0x1], 0  ;;  %s1250_s21 = smov 0   ;;  %s1252_s22 = smov 0  }
   0xc   :  { %s1254_s23 = smov 0   ;;  %s1256_s24 = smov 0  }
   0xd   :  { %s1258_s25 = smov 0   ;;  %s1260_s26 = smov 0  }
   0xe   :  { %s1262_s27 = smov 0   ;;  %s1264_s28 = smov 0  }
   0xf   :  { %s1266_s29 = smov 0   ;;  %s1268_s30 = smov 0  }
  0x10   :  { %s1270_s7 = smov 0  }
  0x11 LB: > { %1605 = sst [smem:[#allocation18_spill]] %s1171_s23  ;;  %s1304_s8 = sadd.s32 4294967295, %s1203_s7   ;;  %s1203_s7 = sphi %s1270_s7, %s32_s7   ;;  %s1199_s30 = sphi %s1268_s30, %s1629_s30   ;;  %s1195_s29 = sphi %s1266_s29, %s1628_s29   ;;  %s1191_s28 = sphi %s1264_s28, %s1627_s28   ;;  %s1187_s27 = sphi %s1262_s27, %s1626_s27   ;;  %s1183_s26 = sphi %s1260_s26, %s1625_s26   ;;  %s1179_s25 = sphi %s1258_s25, %s1633_s25   ;;  %s1175_s24 = sphi %s1256_s24, %s1632_s24   ;;  %s1171_s23 = sphi %s1254_s23, %s1623_s23   ;;  %s1167_s22 = sphi %s1252_s22, %s1631_s22   ;;  %s1163_s21 = sphi %s1250_s21, %s1630_s21  }
  0x12   : > { %1606 = sst [smem:[#allocation19_spill]] %s1183_s26  ;;  %s41_s10 = sadd.s32 1, %s1195_s29 }
  0x13   : > { %1607 = sst [smem:[#allocation20_spill]] %s1195_s29  ;;  %s44_s11 = sadd.s32 1, %s1199_s30 }
  0x14   : > { %1608 = sst [smem:[#allocation21_spill]] %s1199_s30  ;;  %p42_p0 = scmp.ge.s32.totalorder %s41_s10, 2 }
  0x15   : > { %s772_s12 = sshll.u32 %s1199_s30, 1  ;;  %s55_s14 = sadd.s32 1, %s1183_s26 }
  0x16   : > { %s1311_s13 = sadd.s32 %s1195_s29, %s772_s12  ;;  %s1635_s10 = smov (%p42_p0, %s41_s10), 0 }
  0x17   : > { %1609 = sst [smem:[#allocation22_spill]] %s1635_s10  ;;  %s1637_s11 = smov (!%p42_p0, %s44_s11), %s1199_s30 }
  0x18   : > { %p62_p1 = scmp.ne.s32.totalorder %s1183_s26, %s1179_s25  ;;  %p63_p2 = scmp.eq.s32.totalorder %s1203_s7, 0 }
  0x19   : > { %p46_p3 = scmp.ge.s32.totalorder %s1637_s11, 2  ;;  %p68_p4 = scmp.ne.s32.totalorder %s1179_s25, %s1175_s24 }
  0x1a   : > { %p1321_p5 = por %p63_p2, %p62_p1  ;;  %p69_p6 = scmp.eq.s32.totalorder %s1304_s8, 0 }
  0x1b   : > { %s1639_s11 = smov (%p46_p3, %s1637_s11), 0  ;;  %s132_s17 = sadd.s32 1, %s1171_s23 }
  0x1c   : > { %1611 = sst [smem:[#allocation23_spill]] %s1639_s11  ;;  %p1328_p7 = por %p69_p6, %p68_p4 }
  0x1d   : > { %s773_s18 = sshll.u32 %s1639_s11, 1  ;;  %s129_s19 = ssub.s32 %s1199_s30, %s1639_s11 }
  0x1e   : > { %s51_s20 = sadd.s32 %s773_s18, %s1635_s10  ;;  %p130_p8 = scmp.eq.s32.totalorder %s129_s19, 0 }
  0x1f   : > { %s52_s24 = ssub.s32 %s1311_s13, %s51_s20  ;;  %p142_p9 = scmp.ne.s32.totalorder %s1171_s23, %s1167_s22 }
  0x20   : > { %p53_p10 = scmp.eq.s32.totalorder %s52_s24, 0  ;;  %p143_p11 = scmp.eq.s32.totalorder %s1304_s8, 3 }
  0x21   : > { %s1342_s12 = scalar_select %p130_p8, %s1171_s23, %s132_s17  }
  0x22   : > { %s1345_s9 = scalar_select %p53_p10, %s1183_s26, %s55_s14  }
  0x23   : > { %1613 = sst [smem:[#allocation24_spill]] %s1342_s12  ;;  %p1347_p12 = por %p143_p11, %p142_p9 }
  0x24   : > { %1614 = sst [smem:[#allocation25_spill]] %s1345_s9  ;;  %p148_p13 = scmp.ne.s32.totalorder %s1167_s22, %s1163_s21 }
  0x25   : > { %s1616_s11 = sadd.s32 4294967294, %s1203_s7   ;;  %p842_p1 = scmp.lt.s32.totalorder %s1203_s7, 4 }
  0x26   : > { %p149_p0 = scmp.eq.s32.totalorder %s1616_s11, 3  ;;  %s1357_s18 = sand.u32 1, %s1183_s26  }
  0x27   : > { %s778_s17 = sshll.u32 %s1357_s18, 2  ;;  %s808_s20 = sshll.u32 %s1311_s13, 6 }
  0x28   : > { %p1359_p2 = por %p149_p0, %p148_p13  ;;  %s1618_s0 = sld [smem:[#allocation26_spill]] }
  0x29   : > { %s254_s30 = scalar_lea.vmem [#allocation2], %s778_s17  ;;  %p1370_p3 = pnand %p842_p1, %p1321_p5 }
  0x2a   : > { %s264_s9 = sshll.u32 %s254_s30, 4  ;;  %p786_p4 = scmp.ge.s32.totalorder %s1203_s7, 1  ;;  %s265_s9 = int_to_ptr.vmem [resolvable:$true] %s264_s9 }
  0x2b   : > { %p290_p6 = scmp.lt.s32.totalorder %s1203_s7, 5  ;;  %s251_s26 = scalar_lea.sflag [#allocation3], %s1357_s18 }
  0x2c   : > { %p939_p8 = pneg %p1370_p3  ;;  %s950_s13 = scalar_lea.vmem %s265_s9, 64 }
  0x2d   : > { %p951_p9 = scmp.ne.s32.totalorder %s265_s9, %s950_s13  ;;  %s1205_s30 = smov [#allocation2]  }
  0x2e   : > { %s262_s10 = scalar_lea.hbm %s1618_s0, %s808_s20  ;;  %s955_s15 = sshll.u32 %s1205_s30, 4  ;;  %s956_s15 = int_to_ptr.vmem [resolvable:$false] %s955_s15 }
  0x2f   : > { %p953_p10 = pnand %p951_p9, %p939_p8  ;;  %s957_s14 = scalar_lea.vmem %s956_s15, 128 }
  0x30   : > { %p958_p5 = scmp.lt.s32.totalorder %s265_s9, %s956_s15  ;;  %p959_p13 = scmp.lt.s32.totalorder %s957_s14, %s950_s13 }
  0x31   : > { %p954_p11 = pneg %p953_p10 }
  0x32   : > { %p960_p0 = por %p959_p13, %p958_p5 }
  0x34   : > { %p961_p1 = pnand %p960_p0, %p954_p11 }
  0x36   : > { %964 = shalt.err (!%p961_p1)
}
  0x37   : > { %825 = dma.hbm_to_vmem [thread:$0]  (!%p1370_p3), %s262_s10, 64, %s265_s9, %s251_s26  }
  0x38   : > { %p1388_p9 = pnand %p786_p4, %p290_p6  ;;  %s283_s13 = scalar_lea.hbm %s1592_s1, %s808_s20 }
  0x39   : > { %s275_s15 = scalar_lea.vmem [#allocation5], %s778_s17  ;;  %s272_s12 = scalar_lea.sflag [#allocation6], %s1357_s18 }
  0x3a   : > { %s285_s14 = sshll.u32 %s275_s15, 4  ;;  %s1206_s26 = smov [#allocation5]   ;;  %s286_s14 = int_to_ptr.vmem [resolvable:$true] %s285_s14 }
  0x3b   : > { %s978_s23 = scalar_lea.vmem %s286_s14, 64  ;;  %s983_s9 = sshll.u32 %s1206_s26, 4  ;;  %s984_s9 = int_to_ptr.vmem [resolvable:$false] %s983_s9 }
  0x3c   : > { %p979_p10 = scmp.ne.s32.totalorder %s286_s14, %s978_s23  ;;  %s985_s10 = scalar_lea.vmem %s984_s9, 128 }
  0x3d   : > { %p986_p4 = scmp.lt.s32.totalorder %s286_s14, %s984_s9  ;;  %p987_p6 = scmp.lt.s32.totalorder %s985_s10, %s978_s23 }
  0x3e   : > { %p981_p11 = pnand %p979_p10, %p939_p8 }
  0x3f   : > { %p988_p13 = por %p987_p6, %p986_p4 }
  0x40   : > { %p982_p5 = pneg %p981_p11 }
  0x42   : > { %p989_p0 = pnand %p988_p13, %p982_p5 }
  0x44   : > { %992 = shalt.err (!%p989_p0)
}
  0x45   : > { %828 = dma.hbm_to_vmem [thread:$0]  (!%p1370_p3), %s283_s13, 64, %s286_s14, %s272_s12  }
  0x46   : > { %294 = sbr.rel (%p1388_p9) target bundleno = 430 (0x1ae), region = 32  ;;  %s296_s0 = sand.u32 (!%p1388_p9), 1, %s1179_s25  }
  0x47   : > { %s787_s18 = sshll.u32 (!%p1388_p9), %s296_s0, 2  ;;  %s297_s17 = scalar_lea.sflag (!%p1388_p9), [#allocation3], %s296_s0 }
  0x48   : > { %s1404_s20 = scalar_lea.vmem (!%p1388_p9), [#allocation2], %s787_s18 }
  0x4b   : > { %1142 = dma.done.wait (%p1328_p7), %s297_s17, 64  }
  0x4c   : > { %1144 = vsyncadd (%p1328_p7), %s297_s17, 4294967232  ;;  %s306_s23 = scalar_lea.sflag [#allocation6], %s296_s0  ;;  %s309_s30 = scalar_lea.vmem [#allocation5], %s787_s18 }
  0x4d   : > { %1146 = dma.done.wait (%p1328_p7), %s306_s23, 64  }
  0x4e   : > { %1148 = vsyncadd (%p1328_p7), %s306_s23, 4294967232  ;;  %s1415_s12 = sand.u32 1, %s1167_s22   ;;  %p793_p3 = scmp.ne.s32.totalorder %s1187_s27, 0 }
  0x4f   : > { %s789_s11 = sshll.u32 %s1415_s12, 1 }
  0x50   : > { %s1418_s24 = scalar_lea.vmem [#allocation7], %s789_s11  ;;  %s1420_s13 = scalar_lea.vmem [#allocation8], %s789_s11 }
  0x51   : > { %s1422_s15 = scalar_lea.vmem [#allocation10], %s789_s11  ;;  %s1424_s14 = scalar_lea.vmem [#allocation11], %s789_s11 }
  0x52   : > { %367 = sbr.rel (%p793_p3) target bundleno = 90 (0x5a), region = 44 }
  0x57   : > { %v1207_v0 = vmov 0.0  }
  0x58   : > { %368 = vst [vmem:[%s1418_s24] sm:$0x3] %v1207_v0  ;;  %369 = vst [vmem:[%s1420_s13] sm:$0x3] %v1207_v0 }
  0x59   : > { %370 = vst [vmem:[%s1422_s15] sm:$0x3] %v1207_v0  ;;  %371 = vst [vmem:[%s1424_s14] sm:$0x3] %v1207_v0 }
  0x5a PF: > { %v376_v1 = vld [vmem:[%s1593_s2] sm:$0x3]  ;;  %v374_v2 = vlaneseq  ;;  %v1208_v3 = vmov 0   ;;  %v1209_v5 = vmov 1983009808   ;;  %v1210_v7 = vmov 0.0  }
  0x5b   : > { %936 = vset.pattern.permute.xlu0 %v1208_v3  ;;  %v385_v6 = vunpack.c.l.s4 %v1209_v5  ;;  %465 = vmatprep.mubr.f32.mxu0 %v1210_v7  ;;  %v373_v9 = vld [vmem:[%s309_s30] sm:$0xf]  ;;  %vm396_vm0 = vcmask 1041408   ;;  %vm392_vm1 = vcmask 15360   ;;  %v1435_v16 = vld [vmem:[%s1404_s20] sm:$0xf] }
  0x5c   : > { %378 = vperm.xlu0 %936, %v376_v1   ;;  %v388_v4 = vshrl.u32 %v374_v2, 7  ;;  %v375_v13 = vand.u32 127, %v374_v2  ;;  %v480_v17 = vmul.f32 %v373_v9, %v1435_v16  ;;  %v489_v18 = vrot.slane %v373_v9, 2  ;;  %s506_s27 = sand.u32 1, %s1304_s8   ;;  %s1451_s9 = sshll.u32 %s1191_s28, 5 }
  0x5d   : > { %v386_v8 = vunpack.c.0.s8 %v385_v6  ;;  %v478_v19 = vmul.f32 %v373_v9, %v373_v9  ;;  %v1439_v20 = vrot.slane %v1435_v16, 2  ;;  %v476_v22 = vmul.f32 %v1435_v16, %v1435_v16  ;;  %s1458_s18 = scalar_lea.hbm %s1595_s4, %s1451_s9  ;;  %s543_s17 = sshll.u32 %s1420_s13, 4  ;;  %s544_s17 = int_to_ptr.vmem [resolvable:$true] %s543_s17 }
  0x5e   : > { %v491_v24 = vmul.f32 %v489_v18, %v489_v18  ;;  %s1467_s8 = scalar_lea.hbm %s1594_s3, %s1451_s9  ;;  %s1469_s28 = scalar_lea.sflag [#allocation9], %s506_s27 }
  0x5f   : > { %v389_v10 = vsub.s32 %v386_v8, %v388_v4  ;;  %v473_v21 = vld [vmem:[%s1420_s13] sm:$0x3]  ;;  %v472_v25 = vld [vmem:[%s1418_s24] sm:$0x3]  ;;  %v493_v27 = vmul.f32 %v489_v18, %v1439_v20  ;;  %v487_v29 = vmul.f32 %v1439_v20, %v1439_v20  ;;  %s993_s30 = scalar_lea.vmem %s544_s17, 32  ;;  %s1211_s11 = smov [#allocation8]  }
  0x60   : > { %v479_v23 = vadd.f32 %v478_v19, %v473_v21  ;;  %v474_v26 = vld [vmem:[%s1422_s15] sm:$0x3]  ;;  %v477_v28 = vadd.f32 %v476_v22, %v472_v25  ;;  %p994_p7 = scmp.ne.s32.totalorder %s544_s17, %s993_s30  ;;  %s997_s16 = sshll.u32 %s1211_s11, 4  ;;  %s998_s16 = int_to_ptr.vmem [resolvable:$false] %s997_s16 }
  0x61   : > { %v390_v11 = vrot.slane %v373_v9, %v389_v10  ;;  %v481_v30 = vadd.f32 %v480_v17, %v474_v26  ;;  %s999_s26 = scalar_lea.vmem %s998_s16, 64  ;;  %p1000_p9 = scmp.lt.s32.totalorder %s544_s17, %s998_s16 }
  0x62   : > { %v492_v31 = vadd.f32 %v491_v24, %v479_v23  ;;  %v488_v32 = vadd.f32 %v487_v29, %v477_v28  ;;  %p995_p8 = pnand %p994_p7, %p1347_p12  ;;  %p1001_p10 = scmp.lt.s32.totalorder %s999_s26, %s993_s30 }
  0x63   : > { %v391_v12 = vcombine.high %v390_v11, %v390_v11  ;;  %v494_v33 = vadd.f32 %v493_v27, %v481_v30 }
  0x64   : > { %498 = vst [vmem:[%s1420_s13] sm:$0x3] %v492_v31  ;;  %497 = vst [vmem:[%s1418_s24] sm:$0x3] %v488_v32  ;;  %p996_p1 = pneg %p995_p8  ;;  %p1002_p11 = por %p1001_p10, %p1000_p9 }
  0x65   : > { %795 = vmatprep.subr.msk.mxu0 %vm396_vm0, %v391_v12  ;;  %499 = vst [vmem:[%s1422_s15] sm:$0x3] %v494_v33 }
  0x66   : > { %796 = vmatpush1.msk.msra.mxu0 %vm396_vm0, %v390_v11  ;;  %p1003_p5 = pnand %p1002_p11, %p996_p1 }
  0xd7   : > { %v379_v14 = vpop.permute.xlu0 %378 }
  0xd8   : > { %vm380_vm2 = vcmp.eq.s32.totalorder %v375_v13, %v379_v14 }
  0xd9   : > { %v794_v15 = vsel %vm380_vm2, 1.0, %v1210_v7 }
  0xda   : > { %797 = vmatmul.mubr.msk.f32.vlgmr.msra.gmra.mxu0 %vm392_vm1, %v794_v15 }
  0xdb   : > { %1006 = shalt.err (!%p1003_p5)
}
  0xdc   : > { %s1007_s13 = scalar_lea.hbm %s1458_s18, 32  ;;  %s1011_s0 = scalar_lea.hbm %s1595_s4, 64 }
  0xdd   : > { %p1008_p4 = scmp.ne.s32.totalorder %s1458_s18, %s1007_s13  ;;  %p1012_p0 = scmp.lt.s32.totalorder %s1458_s18, %s1595_s4 }
  0xde   : > { %p1013_p3 = scmp.lt.s32.totalorder %s1011_s0, %s1007_s13 }
  0xdf   : > { %p1009_p6 = pnand %p1008_p4, %p1347_p12 }
  0xe0   : > { %p1014_p7 = por %p1013_p3, %p1012_p0 }
  0xe1   : > { %p1010_p13 = pneg %p1009_p6 }
  0xe3   : > { %p1015_p8 = pnand %p1014_p7, %p1010_p13 }
  0xe5   : > { %1018 = shalt.err (!%p1015_p8)
}
  0xe6   : > { %815 = dma.vmem_to_hbm [thread:$0]  (%p1347_p12), %s544_s17, 32, %s1458_s18, %s1469_s28  }
  0xe7   : > { %s530_s30 = sshll.u32 %s1418_s24, 4  ;;  %s1493_s26 = scalar_lea.hbm %s1596_s5, %s1451_s9  ;;  %s531_s30 = int_to_ptr.vmem [resolvable:$true] %s530_s30 }
  0xe8   : > { %s556_s13 = sshll.u32 %s1422_s15, 4  ;;  %s502_s27 = scalar_lea.sflag [#allocation4], %s1415_s12  ;;  %s557_s13 = int_to_ptr.vmem [resolvable:$true] %s556_s13 }
  0xe9   : > { %s1019_s10 = scalar_lea.vmem %s531_s30, 32  ;;  %s1212_s0 = smov [#allocation7]  }
  0xea   : > { %p1020_p1 = scmp.ne.s32.totalorder %s531_s30, %s1019_s10  ;;  %s1023_s20 = sshll.u32 %s1212_s0, 4  ;;  %s1024_s20 = int_to_ptr.vmem [resolvable:$false] %s1023_s20 }
  0xeb   : > { %s1025_s23 = scalar_lea.vmem %s1024_s20, 64  ;;  %p1026_p11 = scmp.lt.s32.totalorder %s531_s30, %s1024_s20 }
  0xec   : > { %p1021_p9 = pnand %p1020_p1, %p1347_p12  ;;  %p1027_p5 = scmp.lt.s32.totalorder %s1025_s23, %s1019_s10 }
  0xee   : > { %p1022_p10 = pneg %p1021_p9  ;;  %p1028_p4 = por %p1027_p5, %p1026_p11 }
  0xf0   : > { %p1029_p6 = pnand %p1028_p4, %p1022_p10 }
  0xf2   : > { %1032 = shalt.err (!%p1029_p6)
}
  0xf3   : > { %s1033_s24 = scalar_lea.hbm %s1467_s8, 32  ;;  %s1037_s17 = scalar_lea.hbm %s1594_s3, 64 }
  0xf4   : > { %p1034_p13 = scmp.ne.s32.totalorder %s1467_s8, %s1033_s24  ;;  %p1038_p7 = scmp.lt.s32.totalorder %s1467_s8, %s1594_s3 }
  0xf5   : > { %p1039_p8 = scmp.lt.s32.totalorder %s1037_s17, %s1033_s24 }
  0xf6   : > { %p1035_p0 = pnand %p1034_p13, %p1347_p12 }
  0xf7   : > { %p1040_p1 = por %p1039_p8, %p1038_p7 }
  0xf8   : > { %p1036_p3 = pneg %p1035_p0 }
  0xfa   : > { %p1041_p9 = pnand %p1040_p1, %p1036_p3 }
  0xfc   : > { %1044 = shalt.err (!%p1041_p9)
}
  0xfd   : > { %814 = dma.vmem_to_hbm [thread:$0]  (%p1347_p12), %s531_s30, 32, %s1467_s8, %s502_s27  }
  0xfe   : > { %s1045_s10 = scalar_lea.vmem %s557_s13, 32  ;;  %s1213_s0 = smov [#allocation10]  }
  0xff   : > { %p1046_p10 = scmp.ne.s32.totalorder %s557_s13, %s1045_s10  ;;  %s1049_s20 = sshll.u32 %s1213_s0, 4  ;;  %s1050_s20 = int_to_ptr.vmem [resolvable:$false] %s1049_s20 }
 0x100   : > { %s1051_s23 = scalar_lea.vmem %s1050_s20, 64  ;;  %p1052_p4 = scmp.lt.s32.totalorder %s557_s13, %s1050_s20 }
 0x101   : > { %p1047_p11 = pnand %p1046_p10, %p1347_p12  ;;  %p1053_p6 = scmp.lt.s32.totalorder %s1051_s23, %s1045_s10 }
 0x103   : > { %p1048_p5 = pneg %p1047_p11  ;;  %p1054_p13 = por %p1053_p6, %p1052_p4 }
 0x105   : > { %p1055_p0 = pnand %p1054_p13, %p1048_p5 }
 0x107   : > { %1058 = shalt.err (!%p1055_p0)
}
 0x108   : > { %s1059_s8 = scalar_lea.hbm %s1493_s26, 32  ;;  %s1063_s24 = scalar_lea.hbm %s1596_s5, 64 }
 0x109   : > { %p1060_p3 = scmp.ne.s32.totalorder %s1493_s26, %s1059_s8  ;;  %p1064_p1 = scmp.lt.s32.totalorder %s1493_s26, %s1596_s5 }
 0x10a   : > { %p1065_p9 = scmp.lt.s32.totalorder %s1063_s24, %s1059_s8 }
 0x10b   : > { %p1061_p7 = pnand %p1060_p3, %p1347_p12 }
 0x10c   : > { %p1066_p10 = por %p1065_p9, %p1064_p1 }
 0x10d   : > { %p1062_p8 = pneg %p1061_p7 }
 0x10f   : > { %p1067_p11 = pnand %p1066_p10, %p1062_p8 }
 0x111   : > { %1070 = shalt.err (!%p1067_p11)
}
 0x112   : > { %816 = dma.vmem_to_hbm [thread:$0]  (%p1347_p12), %s557_s13, 32, %s1493_s26, %s1469_s28   ;;  %v475_v35 = vld [vmem:[%s1424_s14] sm:$0x3] }
 0x113   : > { %s569_s17 = sshll.u32 %s1424_s14, 4  ;;  %s567_s10 = scalar_lea.hbm %s1597_s6, %s1451_s9  ;;  %s570_s17 = int_to_ptr.vmem [resolvable:$true] %s569_s17 }
 0x114   : > { %s517_s0 = scalar_lea.sflag [#allocation12], %s1415_s12  ;;  %s1071_s20 = scalar_lea.vmem %s570_s17, 32 }
 0x115   : > { %p1072_p5 = scmp.ne.s32.totalorder %s570_s17, %s1071_s20  ;;  %s1214_s28 = smov [#allocation11]  }
 0x116   : > { %s1075_s26 = sshll.u32 %s1214_s28, 4  ;;  %s1076_s26 = int_to_ptr.vmem [resolvable:$false] %s1075_s26 }
 0x117   : > { %p1073_p4 = pnand %p1072_p5, %p1347_p12  ;;  %s1077_s13 = scalar_lea.vmem %s1076_s26, 64 }
 0x118   : > { %p1078_p13 = scmp.lt.s32.totalorder %s570_s17, %s1076_s26  ;;  %p1079_p0 = scmp.lt.s32.totalorder %s1077_s13, %s1071_s20 }
 0x119   : > { %p1074_p6 = pneg %p1073_p4 }
 0x11a   : > { %p1080_p3 = por %p1079_p0, %p1078_p13 }
 0x11c   : > { %p1081_p7 = pnand %p1080_p3, %p1074_p6 }
 0x19a   : > { %v467_v34 = vpop.f32.mrf.mxu0 }
 0x19b   : > { %v482_v36 = vmul.f32 %v467_v34, %v1435_v16 }
 0x19c   : > { %v469_v37 = vpop.f32.mrf.mxu0 }
 0x19d   : > { %v483_v38 = vadd.f32 %v482_v36, %v475_v35  ;;  %v495_v39 = vmul.f32 %v1439_v20, %v469_v37 }
 0x19f   : > { %v496_v40 = vadd.f32 %v495_v39, %v483_v38 }
 0x1a1   : > { %500 = vst [vmem:[%s1424_s14] sm:$0x3] %v496_v40 }
 0x1a2   : > { %1084 = shalt.err (!%p1081_p7)
}
 0x1a3   : > { %s1085_s23 = scalar_lea.hbm %s567_s10, 32  ;;  %s1089_s9 = scalar_lea.hbm %s1597_s6, 64 }
 0x1a4   : > { %p1086_p8 = scmp.ne.s32.totalorder %s567_s10, %s1085_s23  ;;  %p1090_p10 = scmp.lt.s32.totalorder %s567_s10, %s1597_s6 }
 0x1a5   : > { %p1091_p11 = scmp.lt.s32.totalorder %s1089_s9, %s1085_s23 }
 0x1a6   : > { %p1087_p1 = pnand %p1086_p8, %p1347_p12 }
 0x1a7   : > { %p1092_p5 = por %p1091_p11, %p1090_p10 }
 0x1a8   : > { %p1088_p9 = pneg %p1087_p1 }
 0x1aa   : > { %p1093_p4 = pnand %p1092_p5, %p1088_p9 }
 0x1ac   : > { %1096 = shalt.err (!%p1093_p4)
}
 0x1ad   : > { %817 = dma.vmem_to_hbm [thread:$0]  (%p1347_p12), %s570_s17, 32, %s567_s10, %s517_s0  }
 0x1ae PF: > { %p843_p6 = scmp.ge.s32.totalorder %s1203_s7, 2  ;;  %s581_s27 = sand.u32 1, %s1163_s21  }
 0x1af   : > { %s582_s24 = scalar_lea.sflag [#allocation4], %s581_s27 }
 0x1b0   : > { %p830_p13 = pnand %p843_p6, %p1359_p2 }
 0x1b2   : > { %p831_p0 = pneg %p830_p13 }
 0x1b4   : > { %1150 = dma.done.wait (%p831_p0), %s582_s24, 32  }
 0x1b5   : > { %1152 = vsyncadd (%p831_p0), %s582_s24, 4294967264  ;;  %s1621_s15 = sadd.s32 4294967294, %s1203_s7  }
 0x1b6   : > { %s590_s18 = sand.u32 1, %s1621_s15  }
 0x1b7   : > { %s591_s11 = scalar_lea.sflag [#allocation9], %s590_s18 }
 0x1b8   : > { %1154 = dma.done.wait (%p831_p0), %s591_s11, 64  }
 0x1b9   : > { %1156 = vsyncadd (%p831_p0), %s591_s11, 4294967232  ;;  %s609_s29 = scalar_lea.sflag [#allocation12], %s581_s27 }
 0x1ba   : > { %1158 = dma.done.wait (%p831_p0), %s609_s29, 32  }
 0x1bb   : > { %1160 = vsyncadd (%p831_p0), %s609_s29, 4294967264  ;;  %s32_s7 = sadd.s32 1, %s1203_s7   ;;  %s1622_s17 = sld [smem:[#allocation18_spill]] }
 0x1bc   : > { %p29_p12 = scmp.ge.s32.totalorder %s32_s7, 6   ;;  %s1623_s23 = sld [smem:[#allocation24_spill]] }
 0x1bd   : > { %s1624_s19 = sld [smem:[#allocation19_spill]]  ;;  %s1630_s21 = smov %s1167_s22 }
 0x1be   : > { %s1625_s26 = sld [smem:[#allocation25_spill]]  ;;  %s1632_s24 = smov %s1179_s25 }
 0x1bf   : > { %s1626_s27 = sld [smem:[#allocation20_spill]]  ;;  %31 = sbr.rel (!%p29_p12) target bundleno = 17 (0x11), region = 143 }
 0x1c0   : > { %s1627_s28 = sld [smem:[#allocation21_spill]] }
 0x1c1   : > { %s1628_s29 = sld [smem:[#allocation22_spill]]  ;;  %s1631_s22 = smov %s1622_s17 }
 0x1c2   : > { %s1629_s30 = sld [smem:[#allocation23_spill]] }
 0x1c3   : > { %s1633_s25 = smov %s1624_s19 }
 0x1c4   :  { %614 = vsyncpa [#allocation3], 1 }
 0x1c5   :  { %616 = vsyncpa [#allocation3 + $0x1], 1 }
 0x1c6   :  { %617 = vsyncpa [#allocation6], 1 }
 0x1c7   :  { %619 = vsyncpa [#allocation6 + $0x1], 1 }
 0x1c8   :  { %620 = vsyncpa [#allocation4], 1 }
 0x1c9   :  { %622 = vsyncpa [#allocation4 + $0x1], 1 }
 0x1ca   :  { %623 = vsyncpa [#allocation9], 1 }
 0x1cb   :  { %625 = vsyncpa [#allocation9 + $0x1], 1 }
 0x1cc   :  { %626 = vsyncpa [#allocation12], 1 }
 0x1cd   :  { %628 = vsyncpa [#allocation12 + $0x1], 1 }

</bundles_post_ra>
